<compile_context>
chip_gen: v7x
topology: tpu7x:2x2x1
jax: 0.10.0
libtpu: 0.0.40
codegen_flags: <defaults>
</compile_context>

<pallas_src>
import jax
import jax.numpy as jnp
from jax.experimental import pallas as pl
from jax.experimental.pallas import tpu as pltpu

LANE = 128


# ---------------- fused Pallas kernel ----------------

def convnet_fused_kernel(ids_ref,     # VMEM (FS, TB*S, 1) int32 -- per-window-offset token ids
                         wemb_ref,    # VMEM (VP, DP) bf16       -- embedding table (resident)
                         wconv_ref,   # VMEM (FS, DP, FP) bf16   -- conv weight per window offset
                         bconv_ref,   # VMEM (1, FP) f32
                         wlin_ref,    # VMEM (FP, CP) bf16
                         blin_ref,    # VMEM (1, CP) f32
                         o_ref):      # VMEM (TB, CP) f32        -- lane-dense output block
    FS, NS, _ = ids_ref.shape         # NS = TB * S
    VP, _ = wemb_ref.shape
    FP = wconv_ref.shape[2]
    TB = o_ref.shape[0]
    S = NS // TB
    L = S - FS + 1                    # valid conv output length (pooling window)

    wemb = wemb_ref[...]                                                    # (VP, DP) bf16
    lane_iota = jax.lax.broadcasted_iota(jnp.int32, (NS, VP), 1)            # hoisted out of loop

    # Conv as FS accumulated 2-D MXU matmuls; the embedding "gather" is a one-hot matmul.
    acc = None
    for k in range(FS):               # FS is small -> static unroll
        oh = jnp.where(lane_iota == ids_ref[k], 1.0, 0.0).astype(jnp.bfloat16)   # (NS, VP)
        embk = jnp.dot(oh, wemb, preferred_element_type=jnp.float32
                       ).astype(jnp.bfloat16)                                    # (NS, DP)
        term = jnp.dot(embk, wconv_ref[k], preferred_element_type=jnp.float32)   # (NS, FP)
        acc = term if acc is None else acc + term

    # Rows tb*S + l: valid conv outputs for l < L (rows l >= L hold padded-window garbage
    # and are excluded from the pool).  Reshape 64 -> (TB, 8) keeps (8,128) vreg tiles.
    conv3 = acc.reshape(TB, S, FP)                                          # (TB, S, FP) f32
    pooled = jnp.max(conv3[:, :L, :], axis=1) + bconv_ref[...]              # bias after max (equiv.)
    pooled = jnp.maximum(pooled, 0.0)                                       # ReLU after pool (equiv.)

    # dropout == identity (eval); linear + sigmoid
    lin = jnp.dot(pooled.astype(jnp.bfloat16), wlin_ref[...],
                  preferred_element_type=jnp.float32) + blin_ref[...]       # (TB, CP)
    o_ref[...] = jax.nn.sigmoid(lin).astype(o_ref.dtype)


# ---------------- wrapper ----------------

def _round_up(x, m):
    return ((x + m - 1) // m) * m


def convnet_forward(ids, w_emb, w_conv, b_conv, w_lin, b_lin, *, block_b=8):
    """ids: (B, S) int32 token ids.  w_emb: (V, D).  w_conv: (FS, D, F) (torch conv
    weight[f, d, k, 0] stored as [k, d, f]).  w_lin: (F, C1) (torch linear.weight.T)."""
    B, S = ids.shape
    V, D = w_emb.shape
    FS, _, F = w_conv.shape
    C1 = w_lin.shape[1]
    if block_b > B:
        block_b = B
    assert B % block_b == 0 and (block_b % 8 == 0 or block_b == B)

    VP = _round_up(V, LANE)    # vocab padded to a lane multiple (one-hot contraction dim)
    DP = _round_up(D, LANE)    # word_vec_size padded
    FP = _round_up(F, LANE)    # num_filters padded (exactly one MXU tile width at F<=128)
    CP = _round_up(C1, LANE)   # classifier width padded

    # Reproduce the module's view/transpose plumbing on the *indices*:
    # conv-input position p of batch element b uses flat row p*B + b of the batch-major
    # (B*S) flattening  ->  ids_perm[b, p] = ids.reshape(S, B)[p, b].
    ids_perm = ids.reshape(S, B).T.astype(jnp.int32)                       # (B, S)

    # Per-window-offset id columns (pure index plumbing, zero FLOPs):
    #   ids_win[k, b*S + l, 0] = ids_perm[b, min(l+k, S-1)]
    # Rows with l >= L reference a clamped position; they are ignored by the pool.
    src = jnp.minimum(jnp.arange(S)[None, :] + jnp.arange(FS)[:, None], S - 1)   # (FS, S)
    ids_win = jnp.transpose(ids_perm[:, src], (1, 0, 2)).reshape(FS, B * S, 1)

    # Weight packing: everything lane-padded, matmul operands in bf16.
    w_emb_p = (jnp.zeros((VP, DP), jnp.float32)
               .at[:V, :D].set(w_emb)).astype(jnp.bfloat16)
    w_conv_p = (jnp.zeros((FS, DP, FP), jnp.float32)
                .at[:, :D, :F].set(w_conv)).astype(jnp.bfloat16)
    b_conv_p = jnp.zeros((1, FP), jnp.float32).at[:, :F].set(b_conv.reshape(1, F))
    w_lin_p = (jnp.zeros((FP, CP), jnp.float32)
               .at[:F, :C1].set(w_lin)).astype(jnp.bfloat16)
    b_lin_p = jnp.zeros((1, CP), jnp.float32).at[:, :C1].set(b_lin.reshape(1, C1))

    out = pl.pallas_call(
        convnet_fused_kernel,
        out_shape=jax.ShapeDtypeStruct((B, CP), jnp.float32),
        grid_spec=pltpu.PrefetchScalarGridSpec(
            num_scalar_prefetch=0,
            grid=(B // block_b,),
            in_specs=[
                pl.BlockSpec((FS, block_b * S, 1), lambda i: (0, i, 0)),   # per-block ids
                pl.BlockSpec((VP, DP), lambda i: (0, 0)),                  # emb table, resident
                pl.BlockSpec((FS, DP, FP), lambda i: (0, 0, 0)),           # conv weights, resident
                pl.BlockSpec((1, FP), lambda i: (0, 0)),
                pl.BlockSpec((FP, CP), lambda i: (0, 0)),
                pl.BlockSpec((1, CP), lambda i: (0, 0)),
            ],
            out_specs=pl.BlockSpec((block_b, CP), lambda i: (i, 0)),
        ),
        compiler_params=pltpu.CompilerParams(
            dimension_semantics=("parallel",),       # >=2 blocks shard across v7x's 2 TCs
            vmem_limit_bytes=32 * 1024 * 1024,       # modest; safe on v5e/v6e/v7x
        ),
    )(ids_win, w_emb_p, w_conv_p, b_conv_p, w_lin_p, b_lin_p)

    return out[:, :C1]


# ---------------- pure-JAX f32 reference (faithful to the PyTorch module) ----------------

def convnet_reference(ids, w_emb, w_conv, b_conv, w_lin, b_lin):
    B, S = ids.shape
    V, D = w_emb.shape
    FS = w_conv.shape[0]
    onehot = jax.nn.one_hot(ids.reshape(-1), V, dtype=jnp.float32)   # input.view(-1, V)
    emb = onehot @ w_emb                                             # (B*S, D)
    emb = emb.reshape(S, B, D)                                       # .view(-1, B, D)
    emb = jnp.transpose(emb, (1, 0, 2))                              # .transpose(0,1) -> (B, S, D)
    # .transpose(1,2).unsqueeze(-1) -> NCHW (B, D, S, 1); (FS,1) conv == 1-D conv along S
    L = S - FS + 1
    acc = sum(jnp.einsum("bld,df->blf", emb[:, k:k + L, :], w_conv[k]) for k in range(FS))
    acc = acc + b_conv.reshape(1, 1, -1)
    pooled = jnp.max(jnp.maximum(acc, 0.0), axis=1)                  # ReLU + MaxPool3d
    return jax.nn.sigmoid(pooled @ w_lin + b_lin.reshape(1, -1))     # dropout == identity


# ---------------- main ----------------

if __name__ == "__main__":
    # Small shapes consistent with the module's opt/dicts:
    B = 16            # batch (2 grid blocks of 8 -> both TCs busy on v7x)
    S = 8             # opt.sequence_length
    V = 64            # dicts.size() (vocab)
    D = 128           # opt.word_vec_size (one full lane tile)
    FS = 3            # opt.filter_size
    F = 16            # opt.num_filters
    NUM_CLASSES = 3   # opt.num_classes -> linear out dim = 2
    C1 = NUM_CLASSES - 1
    PAD = 0           # onmt.Constants.PAD

    key = jax.random.PRNGKey(0)
    k_ids, k_emb, k_cw, k_cb, k_lw, k_lb = jax.random.split(key, 6)

    w_emb = jax.random.normal(k_emb, (V, D), jnp.float32) * 0.1
    w_emb = w_emb.at[PAD].set(0.0)                       # padding_idx row is zero

    # Conv2d weight (F, D, FS, 1) -> stored as (FS, D, F); Linear weight (C1, F) -> (F, C1)
    w_conv = jax.random.normal(k_cw, (FS, D, F), jnp.float32) * 0.1
    b_conv = jax.random.normal(k_cb, (F,), jnp.float32) * 0.1
    w_lin = jax.random.normal(k_lw, (F, C1), jnp.float32) * 0.1
    b_lin = jax.random.normal(k_lb, (C1,), jnp.float32) * 0.1

    ids = jax.random.randint(k_ids, (B, S), 0, V)

    out = convnet_forward(ids, w_emb, w_conv, b_conv, w_lin, b_lin, block_b=8)
    out = jax.block_until_ready(out)

    ref = convnet_reference(ids, w_emb, w_conv, b_conv, w_lin, b_lin)
    assert out.shape == (B, C1), out.shape
    max_err = float(jnp.max(jnp.abs(out - ref)))
    assert max_err < 5e-3, (max_err, out, ref)   # kernel uses bf16 MXU matmuls, ref is f32

    print("KERNEL_OK")
</pallas_src>

<mosaic_0001>
module attributes {stable_mosaic.version = 11 : i64} {
  func.func @convnet_fused_kernel(%arg0: i32, %arg1: memref<3x64x1xi32, #tpu.memory_space<vmem>>, %arg2: memref<128x128xbf16, #tpu.memory_space<vmem>>, %arg3: memref<3x128x128xbf16, #tpu.memory_space<vmem>>, %arg4: memref<1x128xf32, #tpu.memory_space<vmem>>, %arg5: memref<128x128xbf16, #tpu.memory_space<vmem>>, %arg6: memref<1x128xf32, #tpu.memory_space<vmem>>, %arg7: memref<8x128xf32, #tpu.memory_space<vmem>>) attributes {dimension_semantics = [#tpu.dimension_semantics<parallel>], iteration_bounds = array<i64: 2>, scalar_prefetch = 0 : i64, scratch_operands = 0 : i64, tpu.core_type = #tpu.core_type<tc>, window_params = [{transform_indices = @transform_0, window_bounds = array<i64: 3, 64, 1>}, {pipeline_mode = #tpu.pipeline_mode<synchronous>, transform_indices = @transform_1, window_bounds = array<i64: 128, 128>}, {pipeline_mode = #tpu.pipeline_mode<synchronous>, transform_indices = @transform_2, window_bounds = array<i64: 3, 128, 128>}, {pipeline_mode = #tpu.pipeline_mode<synchronous>, transform_indices = @transform_3, window_bounds = array<i64: 1, 128>}, {pipeline_mode = #tpu.pipeline_mode<synchronous>, transform_indices = @transform_4, window_bounds = array<i64: 128, 128>}, {pipeline_mode = #tpu.pipeline_mode<synchronous>, transform_indices = @transform_5, window_bounds = array<i64: 1, 128>}, {transform_indices = @transform_6, window_bounds = array<i64: 8, 128>}]} {
    %c0 = arith.constant 0 : index
    %c0_0 = arith.constant 0 : index
    %0 = vector.load %arg2[%c0, %c0_0] : memref<128x128xbf16, #tpu.memory_space<vmem>>, vector<128x128xbf16>
    %1 = tpu.iota {dimensions = array<i32: 1>} : vector<64x128xi32>
    %c0_1 = arith.constant 0 : index
    %c0_2 = arith.constant 0 : index
    %c0_3 = arith.constant 0 : index
    %2 = vector.load %arg1[%c0_1, %c0_2, %c0_3] : memref<3x64x1xi32, #tpu.memory_space<vmem>>, vector<1x64x1xi32>
    %3 = vector.shape_cast %2 : vector<1x64x1xi32> to vector<64x1xi32>
    %4 = vector.broadcast %3 : vector<64x1xi32> to vector<64x128xi32>
    %5 = arith.cmpi eq, %1, %4 : vector<64x128xi32>
    %cst = arith.constant 1.000000e+00 : f32
    %cst_4 = arith.constant 0.000000e+00 : f32
    %6 = vector.broadcast %cst : f32 to vector<64x128xf32>
    %7 = vector.broadcast %cst_4 : f32 to vector<64x128xf32>
    %8 = arith.select %5, %6, %7 : vector<64x128xi1>, vector<64x128xf32>
    %9 = arith.truncf %8 : vector<64x128xf32> to vector<64x128xbf16>
    %cst_5 = arith.constant dense<0.000000e+00> : vector<64x128xf32>
    %10 = tpu.matmul %9, %0, %cst_5 {dimension_numbers = #tpu.dot_dimension_numbers<[1], [0], [0], [1], [0, 0, 1, 1], [], []>} : vector<64x128xbf16>, vector<128x128xbf16>, vector<64x128xf32> -> vector<64x128xf32>
    %11 = arith.truncf %10 : vector<64x128xf32> to vector<64x128xbf16>
    %c0_6 = arith.constant 0 : index
    %c0_7 = arith.constant 0 : index
    %c0_8 = arith.constant 0 : index
    %12 = vector.load %arg3[%c0_6, %c0_7, %c0_8] : memref<3x128x128xbf16, #tpu.memory_space<vmem>>, vector<1x128x128xbf16>
    %13 = vector.shape_cast %12 : vector<1x128x128xbf16> to vector<128x128xbf16>
    %cst_9 = arith.constant dense<0.000000e+00> : vector<64x128xf32>
    %14 = tpu.matmul %11, %13, %cst_9 {dimension_numbers = #tpu.dot_dimension_numbers<[1], [0], [0], [1], [0, 0, 1, 1], [], []>} : vector<64x128xbf16>, vector<128x128xbf16>, vector<64x128xf32> -> vector<64x128xf32>
    %c1 = arith.constant 1 : index
    %c0_10 = arith.constant 0 : index
    %c0_11 = arith.constant 0 : index
    %15 = vector.load %arg1[%c1, %c0_10, %c0_11] : memref<3x64x1xi32, #tpu.memory_space<vmem>>, vector<1x64x1xi32>
    %16 = vector.shape_cast %15 : vector<1x64x1xi32> to vector<64x1xi32>
    %17 = vector.broadcast %16 : vector<64x1xi32> to vector<64x128xi32>
    %18 = arith.cmpi eq, %1, %17 : vector<64x128xi32>
    %cst_12 = arith.constant 1.000000e+00 : f32
    %cst_13 = arith.constant 0.000000e+00 : f32
    %19 = vector.broadcast %cst_12 : f32 to vector<64x128xf32>
    %20 = vector.broadcast %cst_13 : f32 to vector<64x128xf32>
    %21 = arith.select %18, %19, %20 : vector<64x128xi1>, vector<64x128xf32>
    %22 = arith.truncf %21 : vector<64x128xf32> to vector<64x128xbf16>
    %cst_14 = arith.constant dense<0.000000e+00> : vector<64x128xf32>
    %23 = tpu.matmul %22, %0, %cst_14 {dimension_numbers = #tpu.dot_dimension_numbers<[1], [0], [0], [1], [0, 0, 1, 1], [], []>} : vector<64x128xbf16>, vector<128x128xbf16>, vector<64x128xf32> -> vector<64x128xf32>
    %24 = arith.truncf %23 : vector<64x128xf32> to vector<64x128xbf16>
    %c1_15 = arith.constant 1 : index
    %c0_16 = arith.constant 0 : index
    %c0_17 = arith.constant 0 : index
    %25 = vector.load %arg3[%c1_15, %c0_16, %c0_17] : memref<3x128x128xbf16, #tpu.memory_space<vmem>>, vector<1x128x128xbf16>
    %26 = vector.shape_cast %25 : vector<1x128x128xbf16> to vector<128x128xbf16>
    %cst_18 = arith.constant dense<0.000000e+00> : vector<64x128xf32>
    %27 = tpu.matmul %24, %26, %cst_18 {dimension_numbers = #tpu.dot_dimension_numbers<[1], [0], [0], [1], [0, 0, 1, 1], [], []>} : vector<64x128xbf16>, vector<128x128xbf16>, vector<64x128xf32> -> vector<64x128xf32>
    %28 = arith.addf %14, %27 : vector<64x128xf32>
    %c2 = arith.constant 2 : index
    %c0_19 = arith.constant 0 : index
    %c0_20 = arith.constant 0 : index
    %29 = vector.load %arg1[%c2, %c0_19, %c0_20] : memref<3x64x1xi32, #tpu.memory_space<vmem>>, vector<1x64x1xi32>
    %30 = vector.shape_cast %29 : vector<1x64x1xi32> to vector<64x1xi32>
    %31 = vector.broadcast %30 : vector<64x1xi32> to vector<64x128xi32>
    %32 = arith.cmpi eq, %1, %31 : vector<64x128xi32>
    %cst_21 = arith.constant 1.000000e+00 : f32
    %cst_22 = arith.constant 0.000000e+00 : f32
    %33 = vector.broadcast %cst_21 : f32 to vector<64x128xf32>
    %34 = vector.broadcast %cst_22 : f32 to vector<64x128xf32>
    %35 = arith.select %32, %33, %34 : vector<64x128xi1>, vector<64x128xf32>
    %36 = arith.truncf %35 : vector<64x128xf32> to vector<64x128xbf16>
    %cst_23 = arith.constant dense<0.000000e+00> : vector<64x128xf32>
    %37 = tpu.matmul %36, %0, %cst_23 {dimension_numbers = #tpu.dot_dimension_numbers<[1], [0], [0], [1], [0, 0, 1, 1], [], []>} : vector<64x128xbf16>, vector<128x128xbf16>, vector<64x128xf32> -> vector<64x128xf32>
    %38 = arith.truncf %37 : vector<64x128xf32> to vector<64x128xbf16>
    %c2_24 = arith.constant 2 : index
    %c0_25 = arith.constant 0 : index
    %c0_26 = arith.constant 0 : index
    %39 = vector.load %arg3[%c2_24, %c0_25, %c0_26] : memref<3x128x128xbf16, #tpu.memory_space<vmem>>, vector<1x128x128xbf16>
    %40 = vector.shape_cast %39 : vector<1x128x128xbf16> to vector<128x128xbf16>
    %cst_27 = arith.constant dense<0.000000e+00> : vector<64x128xf32>
    %41 = tpu.matmul %38, %40, %cst_27 {dimension_numbers = #tpu.dot_dimension_numbers<[1], [0], [0], [1], [0, 0, 1, 1], [], []>} : vector<64x128xbf16>, vector<128x128xbf16>, vector<64x128xf32> -> vector<64x128xf32>
    %42 = arith.addf %28, %41 : vector<64x128xf32>
    %43 = vector.shape_cast %42 : vector<64x128xf32> to vector<8x8x128xf32>
    %44 = vector.extract_strided_slice %43 {offsets = [0, 0, 0], sizes = [8, 6, 128], strides = [1, 1, 1]} : vector<8x8x128xf32> to vector<8x6x128xf32>
    %cst_28 = arith.constant dense<0xFF800000> : vector<8x128xf32>
    %45 = vector.multi_reduction <maximumf>, %44, %cst_28 [1] : vector<8x6x128xf32> to vector<8x128xf32>
    %c0_29 = arith.constant 0 : index
    %c0_30 = arith.constant 0 : index
    %46 = vector.load %arg4[%c0_29, %c0_30] : memref<1x128xf32, #tpu.memory_space<vmem>>, vector<1x128xf32>
    %47 = vector.broadcast %46 : vector<1x128xf32> to vector<8x128xf32>
    %48 = arith.addf %45, %47 : vector<8x128xf32>
    %cst_31 = arith.constant 0.000000e+00 : f32
    %49 = vector.broadcast %cst_31 : f32 to vector<8x128xf32>
    %50 = arith.maximumf %48, %49 : vector<8x128xf32>
    %51 = arith.truncf %50 : vector<8x128xf32> to vector<8x128xbf16>
    %c0_32 = arith.constant 0 : index
    %c0_33 = arith.constant 0 : index
    %52 = vector.load %arg5[%c0_32, %c0_33] : memref<128x128xbf16, #tpu.memory_space<vmem>>, vector<128x128xbf16>
    %cst_34 = arith.constant dense<0.000000e+00> : vector<8x128xf32>
    %53 = tpu.matmul %51, %52, %cst_34 {dimension_numbers = #tpu.dot_dimension_numbers<[1], [0], [0], [1], [0, 0, 1, 1], [], []>} : vector<8x128xbf16>, vector<128x128xbf16>, vector<8x128xf32> -> vector<8x128xf32>
    %c0_35 = arith.constant 0 : index
    %c0_36 = arith.constant 0 : index
    %54 = vector.load %arg6[%c0_35, %c0_36] : memref<1x128xf32, #tpu.memory_space<vmem>>, vector<1x128xf32>
    %55 = vector.broadcast %54 : vector<1x128xf32> to vector<8x128xf32>
    %56 = arith.addf %53, %55 : vector<8x128xf32>
    %57 = arith.negf %56 : vector<8x128xf32>
    %58 = math.exp %57 : vector<8x128xf32>
    %cst_37 = arith.constant 1.000000e+00 : f32
    %59 = vector.broadcast %cst_37 : f32 to vector<8x128xf32>
    %60 = arith.addf %59, %58 : vector<8x128xf32>
    %61 = arith.divf %59, %60 : vector<8x128xf32>
    %c0_38 = arith.constant 0 : index
    %c0_39 = arith.constant 0 : index
    %62 = vector.load %arg7[%c0_38, %c0_39] : memref<8x128xf32, #tpu.memory_space<vmem>>, vector<8x128xf32>
    tpu.vector_store %arg7[%c0_38, %c0_39], %61 {strides = array<i32>} : memref<8x128xf32, #tpu.memory_space<vmem>>, vector<8x128xf32>,
    return
  }
  func.func @transform_0(%arg0: i32) -> (i32, i32, i32) {
    %c0_i32 = arith.constant 0 : i32
    %c0_i32_0 = arith.constant 0 : i32
    %c0_i32_1 = arith.constant 0 : i32
    return %c0_i32, %arg0, %c0_i32_0 : i32, i32, i32
  }
  func.func @transform_1(%arg0: i32) -> (i32, i32) {
    %c0_i32 = arith.constant 0 : i32
    %c0_i32_0 = arith.constant 0 : i32
    %c0_i32_1 = arith.constant 0 : i32
    return %c0_i32, %c0_i32_0 : i32, i32
  }
  func.func @transform_2(%arg0: i32) -> (i32, i32, i32) {
    %c0_i32 = arith.constant 0 : i32
    %c0_i32_0 = arith.constant 0 : i32
    %c0_i32_1 = arith.constant 0 : i32
    %c0_i32_2 = arith.constant 0 : i32
    return %c0_i32, %c0_i32_0, %c0_i32_1 : i32, i32, i32
  }
  func.func @transform_3(%arg0: i32) -> (i32, i32) {
    %c0_i32 = arith.constant 0 : i32
    %c0_i32_0 = arith.constant 0 : i32
    %c0_i32_1 = arith.constant 0 : i32
    return %c0_i32, %c0_i32_0 : i32, i32
  }
  func.func @transform_4(%arg0: i32) -> (i32, i32) {
    %c0_i32 = arith.constant 0 : i32
    %c0_i32_0 = arith.constant 0 : i32
    %c0_i32_1 = arith.constant 0 : i32
    return %c0_i32, %c0_i32_0 : i32, i32
  }
  func.func @transform_5(%arg0: i32) -> (i32, i32) {
    %c0_i32 = arith.constant 0 : i32
    %c0_i32_0 = arith.constant 0 : i32
    %c0_i32_1 = arith.constant 0 : i32
    return %c0_i32, %c0_i32_0 : i32, i32
  }
  func.func @transform_6(%arg0: i32) -> (i32, i32) {
    %c0_i32 = arith.constant 0 : i32
    %c0_i32_0 = arith.constant 0 : i32
    return %arg0, %c0_i32 : i32, i32
  }
}

</mosaic_0001>

<bundles_post_ra>
// kernel: tpu_custom_call.1
= control target key start
LH: loop header
LB: loop body
LE: loop exit
PB: predicated region body
PF: predicated region fallthrough
CT: control target
= control target key end

     0   :  { %11 = vsyncpa [#allocation4], 0  ;;  %s2557_s0 = inlined_call_operand.vmem [shape: s32[3,128,1], index: 0, kind: input, shape index: {}]   ;;  %s2558_s1 = inlined_call_operand.vmem [shape: bf16[128,128], index: 1, kind: input, shape index: {}]   ;;  %s2559_s2 = inlined_call_operand.vmem [shape: bf16[3,128,128], index: 2, kind: input, shape index: {}]   ;;  %s2560_s3 = inlined_call_operand.vmem [shape: f32[1,128], index: 3, kind: input, shape index: {}]   ;;  %s2561_s4 = inlined_call_operand.vmem [shape: bf16[128,128], index: 4, kind: input, shape index: {}]   ;;  %s2562_s5 = inlined_call_operand.vmem [shape: f32[1,128], index: 5, kind: input, shape index: {}]   ;;  %s2563_s6 = inlined_call_operand.hbm [shape: f32[16,128], index: 6, kind: output, shape index: {}]  }
   0x1   :  { %13 = vsyncpa [#allocation4 + $0x1], 0  ;;  %s2114_s21 = smov 0   ;;  %s2116_s22 = smov 0  }
   0x2   :  { %s2118_s23 = smov 0   ;;  %s2120_s24 = smov 0  }
   0x3 LB: > { %s1530_s25 = sadd.s32 4294967295, %s2072_s24   ;;  %s1531_s26 = sadd.s32 4294967294, %s2072_s24   ;;  %s2072_s24 = sphi %s2120_s24, %s2569_s24   ;;  %s2068_s23 = sphi %s2118_s23, %s2568_s23   ;;  %s2064_s22 = sphi %s2116_s22, %s2567_s22   ;;  %s2060_s21 = sphi %s2114_s21, %s2566_s21  }
   0x4   : > { %s2137_s27 = sadd.s32 1, %s2072_s24   ;;  %s26_s28 = sadd.s32 1, %s2068_s23 }
   0x5   : > { %s23_s29 = ssub.s32 %s2072_s24, %s2137_s27  ;;  %p33_p0 = scmp.ne.s32.totalorder %s2068_s23, %s2064_s22 }
   0x6   : > { %p24_p1 = scmp.eq.s32.totalorder %s23_s29, 0  ;;  %p34_p2 = scmp.eq.s32.totalorder %s2072_s24, 0 }
   0x7   : > { %p168_p3 = scmp.eq.s32.totalorder %s1530_s25, 1  ;;  %p173_p4 = scmp.ne.s32.totalorder %s2064_s22, %s2060_s21 }
   0x8   : > { %s2150_s30 = scalar_select %p24_p1, %s2068_s23, %s26_s28  }
   0x9   : > { %p35_p5 = por %p34_p2, %p33_p0  ;;  %p2152_p6 = por %p168_p3, %p33_p0 }
   0xa   : > { %p174_p7 = scmp.eq.s32.totalorder %s1531_s26, 1  ;;  %p1533_p9 = scmp.ge.s32.totalorder %s2072_s24, 2 }
   0xc   : > { %p2156_p8 = por %p174_p7, %p173_p4  ;;  %205 = sbr.rel (%p1533_p9) target bundleno = 36 (0x24), region = 36 }
  0x13   : > { %208 = sbr.rel (!%p35_p5) target bundleno = 36 (0x24), region = 40  ;;  %s210_s9 = sand.u32 (%p35_p5), 1, %s2068_s23  }
  0x14   : > { %s1657_s10 = sshll.u32 (%p35_p5), %s2072_s24, 6  ;;  %s1919_s11 = smul.u32 (%p35_p5), 192, %s210_s9 }
  0x15   : > { %s2168_s14 = scalar_lea.vmem (%p35_p5), %s2557_s0, %s1657_s10 }
  0x16   : > { %v289_v0 = vld [vmem:[%s2168_s14] sm:$0xff] (%p35_p5)  ;;  %v291_v1 = vld [vmem:[%s2168_s14 + $0x8] sm:$0xff] (%p35_p5)  ;;  %v293_v2 = vld [vmem:[%s2168_s14 + $0x10] sm:$0xff] (%p35_p5)  ;;  %s2176_s15 = scalar_lea.vmem (%p35_p5), [#allocation2], %s1919_s11 }
  0x17   : > { %v295_v3 = vld [vmem:[%s2168_s14 + $0x18] sm:$0xff] (%p35_p5)  ;;  %v297_v4 = vld [vmem:[%s2168_s14 + $0x20] sm:$0xff] (%p35_p5)  ;;  %v299_v5 = vld [vmem:[%s2168_s14 + $0x28] sm:$0xff] (%p35_p5)  ;;  %290 = vst [vmem:[%s2176_s15] sm:$0xff] (%p35_p5), %v289_v0 }
  0x18   : > { %292 = vst [vmem:[%s2176_s15 + $0x8] sm:$0xff] (%p35_p5), %v291_v1  ;;  %294 = vst [vmem:[%s2176_s15 + $0x10] sm:$0xff] (%p35_p5), %v293_v2  ;;  %v301_v6 = vld [vmem:[%s2168_s14 + $0x30] sm:$0xff] (%p35_p5)  ;;  %v303_v7 = vld [vmem:[%s2168_s14 + $0x38] sm:$0xff] (%p35_p5) }
  0x19   : > { %296 = vst [vmem:[%s2176_s15 + $0x18] sm:$0xff] (%p35_p5), %v295_v3  ;;  %298 = vst [vmem:[%s2176_s15 + $0x20] sm:$0xff] (%p35_p5), %v297_v4  ;;  %v305_v8 = vld [vmem:[%s2168_s14 + $0x80] sm:$0xff] (%p35_p5)  ;;  %v307_v9 = vld [vmem:[%s2168_s14 + $0x88] sm:$0xff] (%p35_p5) }
  0x1a   : > { %300 = vst [vmem:[%s2176_s15 + $0x28] sm:$0xff] %v299_v5  ;;  %302 = vst [vmem:[%s2176_s15 + $0x30] sm:$0xff] %v301_v6  ;;  %v309_v10 = vld [vmem:[%s2168_s14 + $0x90] sm:$0xff]  ;;  %v311_v11 = vld [vmem:[%s2168_s14 + $0x98] sm:$0xff] }
  0x1b   : > { %304 = vst [vmem:[%s2176_s15 + $0x38] sm:$0xff] %v303_v7  ;;  %306 = vst [vmem:[%s2176_s15 + $0x40] sm:$0xff] %v305_v8  ;;  %v313_v12 = vld [vmem:[%s2168_s14 + $0xa0] sm:$0xff]  ;;  %v315_v13 = vld [vmem:[%s2168_s14 + $0xa8] sm:$0xff] }
  0x1c   : > { %308 = vst [vmem:[%s2176_s15 + $0x48] sm:$0xff] %v307_v9  ;;  %310 = vst [vmem:[%s2176_s15 + $0x50] sm:$0xff] %v309_v10  ;;  %v317_v14 = vld [vmem:[%s2168_s14 + $0xb0] sm:$0xff]  ;;  %v319_v15 = vld [vmem:[%s2168_s14 + $0xb8] sm:$0xff] }
  0x1d   : > { %312 = vst [vmem:[%s2176_s15 + $0x58] sm:$0xff] %v311_v11  ;;  %314 = vst [vmem:[%s2176_s15 + $0x60] sm:$0xff] %v313_v12  ;;  %v321_v16 = vld [vmem:[%s2168_s14 + $0x100] sm:$0xff]  ;;  %v323_v17 = vld [vmem:[%s2168_s14 + $0x108] sm:$0xff] }
  0x1e   : > { %316 = vst [vmem:[%s2176_s15 + $0x68] sm:$0xff] %v315_v13  ;;  %318 = vst [vmem:[%s2176_s15 + $0x70] sm:$0xff] %v317_v14  ;;  %v325_v18 = vld [vmem:[%s2168_s14 + $0x110] sm:$0xff]  ;;  %v327_v19 = vld [vmem:[%s2168_s14 + $0x118] sm:$0xff] }
  0x1f   : > { %320 = vst [vmem:[%s2176_s15 + $0x78] sm:$0xff] %v319_v15  ;;  %322 = vst [vmem:[%s2176_s15 + $0x80] sm:$0xff] %v321_v16  ;;  %v329_v20 = vld [vmem:[%s2168_s14 + $0x120] sm:$0xff]  ;;  %v331_v21 = vld [vmem:[%s2168_s14 + $0x128] sm:$0xff] }
  0x20   : > { %324 = vst [vmem:[%s2176_s15 + $0x88] sm:$0xff] %v323_v17  ;;  %326 = vst [vmem:[%s2176_s15 + $0x90] sm:$0xff] %v325_v18  ;;  %v333_v22 = vld [vmem:[%s2168_s14 + $0x130] sm:$0xff]  ;;  %v335_v23 = vld [vmem:[%s2168_s14 + $0x138] sm:$0xff] }
  0x21   : > { %328 = vst [vmem:[%s2176_s15 + $0x98] sm:$0xff] %v327_v19  ;;  %330 = vst [vmem:[%s2176_s15 + $0xa0] sm:$0xff] %v329_v20 }
  0x22   : > { %332 = vst [vmem:[%s2176_s15 + $0xa8] sm:$0xff] %v331_v21  ;;  %334 = vst [vmem:[%s2176_s15 + $0xb0] sm:$0xff] %v333_v22 }
  0x23   : > { %336 = vst [vmem:[%s2176_s15 + $0xb8] sm:$0xff] %v335_v23 }
  0x24 PF: > { %p1536_p10 = scmp.ge.s32.totalorder %s2072_s24, 1  ;;  %p341_p11 = scmp.lt.s32.totalorder %s2072_s24, 3 }
  0x26   : > { %p342_p12 = pnand %p1536_p10, %p341_p11 }
  0x27   : > { %s2223_s16 = sand.u32 (!%p342_p12), 1, %s2064_s22   ;;  %v2074_v24 = vmov (!%p342_p12), 0   ;;  %v2229_v25 = vld [vmem:[%s2558_s1] sm:$0xff] (!%p342_p12)   ;;  %v2234_v26 = vld [vmem:[%s2558_s1 + $0x8] sm:$0xff] (!%p342_p12)   ;;  %v2248_v31 = vld [vmem:[%s2558_s1 + $0x10] sm:$0xff] (!%p342_p12)   ;;  %v395_v57 = vlaneseq (!%p342_p12)  ;;  %s1654_s20 = sshll.u32 (!%p342_p12), %s1530_s25, 7 }
  0x28   : > { %345 = sbr.rel (%p342_p12) target bundleno = 1002 (0x3ea), region = 78  ;;  %1965 = vset.pattern.permute.xlu1 (!%p342_p12), %v2074_v24  ;;  %1964 = vset.pattern.permute.xlu0 (!%p342_p12), %v2074_v24  ;;  %v2259_v35 = vld [vmem:[%s2558_s1 + $0x18] sm:$0xff] (!%p342_p12)   ;;  %v2266_v37 = vld [vmem:[%s2558_s1 + $0x20] sm:$0xff] (!%p342_p12)   ;;  %v2274_v40 = vld [vmem:[%s2558_s1 + $0x28] sm:$0xff] (!%p342_p12)   ;;  %v2075_v63 = vmov (!%p342_p12), 1.0|1.0   ;;  %s2513_s10 = scalar_lea.hbm (!%p342_p12), %s2563_s6, %s1654_s20 }
  0x29   : > { %s1920_s17 = smul.u32 (!%p342_p12), 192, %s2223_s16  ;;  %1739 = vmatprep.subr.bf16.mxu1 (!%p342_p12), %v2229_v25  ;;  %v2283_v43 = vld [vmem:[%s2558_s1 + $0x30] sm:$0xff] (!%p342_p12)   ;;  %v2292_v46 = vld [vmem:[%s2558_s1 + $0x38] sm:$0xff] (!%p342_p12)   ;;  %v2309_v60 = vand.u32 (!%p342_p12), 127, %v395_v57  ;;  %v1974_v20 = vld [vmem:[%s2559_s2 + $0x40] sm:$0xff] (!%p342_p12)   ;;  %s1537_s19 = sshll.u32 (!%p342_p12), %s2223_s16, 3 }
  0x2a   : > { %1740 = vmatpush3.bf16.msra.mxu1 (!%p342_p12), %v2229_v25  ;;  %1787 = vmatprep.subr.bf16.mxu0 (!%p342_p12), %v1974_v20  ;;  %v1975_v21 = vld [vmem:[%s2559_s2 + $0x48] sm:$0xff] (!%p342_p12)   ;;  %v1976_v22 = vld [vmem:[%s2559_s2 + $0x50] sm:$0xff] (!%p342_p12)   ;;  %v1977_v23 = vld [vmem:[%s2559_s2 + $0x58] sm:$0xff] (!%p342_p12)   ;;  %s376_s26 = scalar_lea.vmem (!%p342_p12), [#allocation3], %s1537_s19  ;;  %s1453_s11 = scalar_lea.sflag (!%p342_p12), [#allocation4], %s2223_s16 }
  0x2b   : > { %s2237_s28 = scalar_lea.vmem (!%p342_p12), [#allocation2], %s1920_s17  ;;  %1741 = vmatprep.subr.bf16.mxu1 (!%p342_p12), %v2234_v26  ;;  %1788 = vmatpush3.bf16.msra.mxu0 (!%p342_p12), %v1974_v20  ;;  %v1978_v24 = vld [vmem:[%s2559_s2 + $0x60] sm:$0xff] (!%p342_p12)   ;;  %v1987_v57 = vld [vmem:[%s2559_s2 + $0x28] sm:$0xff] (!%p342_p12)   ;;  %v2001_v20 = vld [vmem:[%s2561_s4 + $0x18] sm:$0xff] (!%p342_p12)   ;;  %s2078_s25 = smov (!%p342_p12), [#allocation3]  }
  0x2c   : > { %v399_v27 = vld [vmem:[%s2237_s28 + $0x10] sm:$0xff] (!%p342_p12)  ;;  %v397_v28 = vld [vmem:[%s2237_s28] sm:$0xff] (!%p342_p12)  ;;  %v400_v29 = vld [vmem:[%s2237_s28 + $0x18] sm:$0xff] (!%p342_p12)  ;;  %1789 = vmatprep.subr.bf16.mxu0 (!%p342_p12), %v1975_v21  ;;  %s2014_s13 = sshll.u32 (!%p342_p12), %s2078_s25, 4  ;;  %s2015_s13 = int_to_ptr.vmem [resolvable:$false] %s2014_s13 }
  0x2d   : > { %412 = vperm.xlu1 (!%p342_p12), %1965, %v399_v27   ;;  %406 = vperm.xlu0 (!%p342_p12), %1964, %v397_v28   ;;  %v398_v30 = vld [vmem:[%s2237_s28 + $0x8] sm:$0xff] (!%p342_p12)  ;;  %v401_v33 = vld [vmem:[%s2237_s28 + $0x20] sm:$0xff] (!%p342_p12)  ;;  %v404_v34 = vld [vmem:[%s2237_s28 + $0x38] sm:$0xff] (!%p342_p12)  ;;  %s2016_s14 = scalar_lea.vmem (!%p342_p12), %s2015_s13, 256 }
  0x2e   : > { %1742 = vmatpush3.bf16.msra.mxu1 (!%p342_p12), %v2234_v26  ;;  %v402_v32 = vld [vmem:[%s2237_s28 + $0x28] sm:$0xff] (!%p342_p12)  ;;  %v403_v36 = vld [vmem:[%s2237_s28 + $0x30] sm:$0xff] (!%p342_p12)  ;;  %v1554_v39 = vld [vmem:[%s2237_s28 + $0x40] sm:$0xff] (!%p342_p12) }
  0x2f   : > { %1743 = vmatprep.subr.bf16.mxu1 %v2248_v31  ;;  %v1555_v38 = vld [vmem:[%s2237_s28 + $0x48] sm:$0xff]  ;;  %v1557_v41 = vld [vmem:[%s2237_s28 + $0x58] sm:$0xff]  ;;  %v1556_v42 = vld [vmem:[%s2237_s28 + $0x50] sm:$0xff]  ;;  %1790 = vmatpush3.bf16.msra.mxu0 %v1975_v21 }
  0x30   : > { %v1559_v44 = vld [vmem:[%s2237_s28 + $0x68] sm:$0xff]  ;;  %v1558_v45 = vld [vmem:[%s2237_s28 + $0x60] sm:$0xff]  ;;  %v1561_v47 = vld [vmem:[%s2237_s28 + $0x78] sm:$0xff]  ;;  %1791 = vmatprep.subr.bf16.mxu0 %v1976_v22 }
  0x31   : > { %415 = vperm.xlu1 %1965, %v400_v29   ;;  %409 = vperm.xlu0 %1964, %v398_v30   ;;  %v1560_v48 = vld [vmem:[%s2237_s28 + $0x70] sm:$0xff]  ;;  %v1603_v49 = vld [vmem:[%s2237_s28 + $0x88] sm:$0xff]  ;;  %v1602_v50 = vld [vmem:[%s2237_s28 + $0x80] sm:$0xff] }
  0x32   : > { %1744 = vmatpush3.bf16.msra.mxu1 %v2248_v31  ;;  %v1605_v51 = vld [vmem:[%s2237_s28 + $0x98] sm:$0xff]  ;;  %v1604_v52 = vld [vmem:[%s2237_s28 + $0x90] sm:$0xff]  ;;  %v1607_v53 = vld [vmem:[%s2237_s28 + $0xa8] sm:$0xff] }
  0x33   : > { %1745 = vmatprep.subr.bf16.mxu1 %v2259_v35  ;;  %v1606_v54 = vld [vmem:[%s2237_s28 + $0xa0] sm:$0xff]  ;;  %v1609_v55 = vld [vmem:[%s2237_s28 + $0xb8] sm:$0xff]  ;;  %v1608_v56 = vld [vmem:[%s2237_s28 + $0xb0] sm:$0xff]  ;;  %1792 = vmatpush3.bf16.msra.mxu0 %v1976_v22  ;;  %s1466_s28 = sshll.u32 %s376_s26, 4  ;;  %s2515_s28 = int_to_ptr.vmem [resolvable:$true] %s1466_s28 }
  0x34   : > { %1793 = vmatprep.subr.bf16.mxu0 %v1977_v23  ;;  %v1981_v27 = vld [vmem:[%s2559_s2 + $0x78] sm:$0xff]   ;;  %v1982_v28 = vld [vmem:[%s2559_s2] sm:$0xff]   ;;  %v2003_v22 = vld [vmem:[%s2561_s4 + $0x28] sm:$0xff]   ;;  %s2010_s12 = scalar_lea.vmem %s2515_s28, 128  ;;  %p2017_p2 = scmp.lt.s32.totalorder %s2515_s28, %s2015_s13 }
  0x35   : > { %421 = vperm.xlu1 %1965, %v402_v32   ;;  %418 = vperm.xlu0 %1964, %v401_v33   ;;  %v2002_v21 = vld [vmem:[%s2561_s4 + $0x20] sm:$0xff]   ;;  %p2011_p13 = scmp.ne.s32.totalorder %s2515_s28, %s2010_s12  ;;  %p2018_p3 = scmp.lt.s32.totalorder %s2016_s14, %s2010_s12 }
  0x36   : > { %1746 = vmatpush3.bf16.msra.mxu1 %v2259_v35 }
  0x37   : > { %1747 = vmatprep.subr.bf16.mxu1 %v2266_v37  ;;  %1794 = vmatpush3.bf16.msra.mxu0 %v1977_v23  ;;  %v2004_v23 = vld [vmem:[%s2561_s4 + $0x30] sm:$0xff]   ;;  %p2012_p0 = pnand %p2011_p13, %p2152_p6  ;;  %p2019_p4 = por %p2018_p3, %p2017_p2 }
  0x38   : > { %1795 = vmatprep.subr.bf16.mxu0 %v1978_v24 }
  0x39   : > { %427 = vperm.xlu1 %1965, %v404_v34   ;;  %424 = vperm.xlu0 %1964, %v403_v36   ;;  %p2013_p1 = pneg %p2012_p0 }
  0x3a   : > { %1748 = vmatpush3.bf16.msra.mxu1 %v2266_v37 }
  0x3b   : > { %1749 = vmatprep.subr.bf16.mxu1 %v2274_v40  ;;  %1796 = vmatpush3.bf16.msra.mxu0 %v1978_v24  ;;  %v2005_v24 = vld [vmem:[%s2561_s4 + $0x38] sm:$0xff]   ;;  %p2020_p5 = pnand %p2019_p4, %p2013_p1 }
  0x3d   : > { %595 = vperm.xlu1 %1965, %v1555_v38   ;;  %592 = vperm.xlu0 %1964, %v1554_v39  }
  0x3e   : > { %1750 = vmatpush3.bf16.msra.mxu1 %v2274_v40 }
  0x3f   : > { %1751 = vmatprep.subr.bf16.mxu1 %v2283_v43 }
  0x41   : > { %601 = vperm.xlu1 %1965, %v1557_v41   ;;  %598 = vperm.xlu0 %1964, %v1556_v42  }
  0x42   : > { %1752 = vmatpush3.bf16.msra.mxu1 %v2283_v43 }
  0x43   : > { %1753 = vmatprep.subr.bf16.mxu1 %v2292_v46 }
  0x45   : > { %607 = vperm.xlu1 %1965, %v1559_v44   ;;  %604 = vperm.xlu0 %1964, %v1558_v45  }
  0x46   : > { %1754 = vmatpush3.bf16.msra.mxu1 %v2292_v46 }
  0x47   : > { %1763 = vmatprep.subr.bf16.mxu1 %v2229_v25 }
  0x49   : > { %613 = vperm.xlu1 %1965, %v1561_v47   ;;  %610 = vperm.xlu0 %1964, %v1560_v48   ;;  %v1983_v47 = vld [vmem:[%s2559_s2 + $0x8] sm:$0xff]  }
  0x4d   : > { %960 = vperm.xlu1 %1965, %v1603_v49   ;;  %957 = vperm.xlu0 %1964, %v1602_v50   ;;  %v1984_v50 = vld [vmem:[%s2559_s2 + $0x10] sm:$0xff]  }
  0x51   : > { %966 = vperm.xlu1 %1965, %v1605_v51   ;;  %963 = vperm.xlu0 %1964, %v1604_v52  }
  0x55   : > { %972 = vperm.xlu1 %1965, %v1607_v53   ;;  %969 = vperm.xlu0 %1964, %v1606_v54  }
  0x59   : > { %978 = vperm.xlu1 %1965, %v1609_v55   ;;  %975 = vperm.xlu0 %1964, %v1608_v56   ;;  %v1985_v55 = vld [vmem:[%s2559_s2 + $0x18] sm:$0xff]   ;;  %v1986_v56 = vld [vmem:[%s2559_s2 + $0x20] sm:$0xff]  }
  0xac   : > { %v413_v58 = vpop.permute.xlu1 %412  ;;  %v407_v59 = vpop.permute.xlu0 %406 }
  0xad   : > { %vm431_vm0 = vcmp.eq.s32.totalorder %v2309_v60, %v413_v58  ;;  %vm429_vm3 = vcmp.eq.s32.totalorder %v2309_v60, %v407_v59  ;;  %v1988_v58 = vld [vmem:[%s2559_s2 + $0x30] sm:$0xff]   ;;  %v1989_v59 = vld [vmem:[%s2559_s2 + $0x38] sm:$0xff]  }
  0xb0   : > { %v416_v61 = vpop.permute.xlu1 %415  ;;  %v410_v62 = vpop.permute.xlu0 %409 }
  0xb1   : > { %vm432_vm1 = vcmp.eq.s32.totalorder %v2309_v60, %v416_v61  ;;  %vm430_vm2 = vcmp.eq.s32.totalorder %v2309_v60, %v410_v62  ;;  %v1990_v62 = vld [vmem:[%s2559_s2 + $0x80] sm:$0xff]  }
  0xb2   : > { %vm1548_vm4 = vmpackc.low %vm432_vm1, %vm431_vm0 }
  0xb3   : > { %vm1546_vm5 = vmpackc.low %vm430_vm2, %vm429_vm3 }
  0xb4   : > { %1755 = vmatprep.mubr.msk.bf16.mxu1 %vm1546_vm5, %v2075_v63  ;;  %v422_v0 = vpop.permute.xlu1 %421  ;;  %v419_v1 = vpop.permute.xlu0 %418 }
  0xb5   : > { %vm434_vm6 = vcmp.eq.s32.totalorder %v2309_v60, %v422_v0  ;;  %1756 = vmatmul.mubr.msk.bf16.vlgmr.msra.gmra.mrb[0].mxu1 %vm1548_vm4, %v2075_v63  ;;  %vm433_vm7 = vcmp.eq.s32.totalorder %v2309_v60, %v419_v1 }
  0xb6   : > { %1764 = vmatpush3.bf16.msra.mxu1 %v2229_v25  ;;  %vm1550_vm8 = vmpackc.low %vm434_vm6, %vm433_vm7 }
  0xb7   : > { %1759 = vmatprep.mubr.msk.bf16.mxu1 %vm1550_vm8, %v2075_v63  ;;  %1765 = vmatprep.subr.bf16.mxu1 %v2234_v26 }
  0xb8   : > { %v428_v2 = vpop.permute.xlu1 %427  ;;  %v425_v3 = vpop.permute.xlu0 %424 }
  0xb9   : > { %vm436_vm9 = vcmp.eq.s32.totalorder %v2309_v60, %v428_v2  ;;  %vm435_vm10 = vcmp.eq.s32.totalorder %v2309_v60, %v425_v3  ;;  %v1991_v3 = vld [vmem:[%s2559_s2 + $0x88] sm:$0xff]  }
  0xba   : > { %1766 = vmatpush3.bf16.msra.mxu1 %v2234_v26  ;;  %vm1552_vm11 = vmpackc.low %vm436_vm9, %vm435_vm10 }
  0xbb   : > { %1767 = vmatprep.subr.bf16.mxu1 %v2248_v31 }
  0xbc   : > { %v596_v4 = vpop.permute.xlu1 %595  ;;  %v593_v5 = vpop.permute.xlu0 %592 }
  0xbd   : > { %vm616_vm12 = vcmp.eq.s32.totalorder %v2309_v60, %v596_v4  ;;  %1760 = vmatmul.mubr.msk.bf16.gmra.mrb[4].mxu1 %vm1552_vm11, %v2075_v63  ;;  %vm615_vm13 = vcmp.eq.s32.totalorder %v2309_v60, %v593_v5 }
  0xbe   : > { %1768 = vmatpush3.bf16.msra.mxu1 %v2248_v31  ;;  %vm1562_vm14 = vmpackc.low %vm616_vm12, %vm615_vm13 }
  0xbf   : > { %1769 = vmatprep.subr.bf16.mxu1 %v2259_v35  ;;  %1779 = vmatprep.mubr.msk.bf16.mxu1 %vm1562_vm14, %v2075_v63 }
  0xc0   : > { %v602_v6 = vpop.permute.xlu1 %601  ;;  %v599_v7 = vpop.permute.xlu0 %598 }
  0xc1   : > { %vm618_vm15 = vcmp.eq.s32.totalorder %v2309_v60, %v602_v6  ;;  %vm617_vm0 = vcmp.eq.s32.totalorder %v2309_v60, %v599_v7  ;;  %v1992_v6 = vld [vmem:[%s2559_s2 + $0x90] sm:$0xff]  }
  0xc2   : > { %1770 = vmatpush3.bf16.msra.mxu1 %v2259_v35  ;;  %vm1564_vm3 = vmpackc.low %vm618_vm15, %vm617_vm0 }
  0xc3   : > { %1771 = vmatprep.subr.bf16.mxu1 %v2266_v37 }
  0xc4   : > { %v608_v8 = vpop.permute.xlu1 %607  ;;  %v605_v9 = vpop.permute.xlu0 %604 }
  0xc5   : > { %vm620_vm1 = vcmp.eq.s32.totalorder %v2309_v60, %v608_v8  ;;  %vm619_vm2 = vcmp.eq.s32.totalorder %v2309_v60, %v605_v9 }
  0xc6   : > { %1772 = vmatpush3.bf16.msra.mxu1 %v2266_v37  ;;  %vm1566_vm4 = vmpackc.low %vm620_vm1, %vm619_vm2 }
  0xc7   : > { %1773 = vmatprep.subr.bf16.mxu1 %v2274_v40 }
  0xc8   : > { %v614_v10 = vpop.permute.xlu1 %613  ;;  %v611_v11 = vpop.permute.xlu0 %610 }
  0xc9   : > { %vm622_vm5 = vcmp.eq.s32.totalorder %v2309_v60, %v614_v10  ;;  %vm621_vm6 = vcmp.eq.s32.totalorder %v2309_v60, %v611_v11  ;;  %v1993_v11 = vld [vmem:[%s2559_s2 + $0x98] sm:$0xff]  }
  0xca   : > { %1774 = vmatpush3.bf16.msra.mxu1 %v2274_v40  ;;  %vm1568_vm9 = vmpackc.low %vm622_vm5, %vm621_vm6  ;;  %vm1207_vm5 = vcmask 1045504   ;;  %vm1335_vm6 = vcmask 1041409  }
  0xcb   : > { %1775 = vmatprep.subr.bf16.mxu1 %v2283_v43 }
  0xcc   : > { %v961_v12 = vpop.permute.xlu1 %960  ;;  %v958_v13 = vpop.permute.xlu0 %957 }
  0xcd   : > { %vm981_vm7 = vcmp.eq.s32.totalorder %v2309_v60, %v961_v12  ;;  %vm980_vm8 = vcmp.eq.s32.totalorder %v2309_v60, %v958_v13  ;;  %v1994_v12 = vld [vmem:[%s2559_s2 + $0xa0] sm:$0xff]   ;;  %v1995_v13 = vld [vmem:[%s2559_s2 + $0xa8] sm:$0xff]  }
  0xce   : > { %1776 = vmatpush3.bf16.msra.mxu1 %v2283_v43  ;;  %vm1610_vm10 = vmpackc.low %vm981_vm7, %vm980_vm8  ;;  %vm1338_vm7 = vcmask 1042434   ;;  %vm1341_vm8 = vcmask 1043459  }
  0xcf   : > { %1777 = vmatprep.subr.bf16.mxu1 %v2292_v46 }
  0xd0   : > { %v967_v14 = vpop.permute.xlu1 %966  ;;  %v964_v15 = vpop.permute.xlu0 %963 }
  0xd1   : > { %vm983_vm11 = vcmp.eq.s32.totalorder %v2309_v60, %v967_v14  ;;  %vm982_vm12 = vcmp.eq.s32.totalorder %v2309_v60, %v964_v15  ;;  %v1996_v14 = vld [vmem:[%s2559_s2 + $0xb0] sm:$0xff]   ;;  %v1997_v15 = vld [vmem:[%s2559_s2 + $0xb8] sm:$0xff]  }
  0xd2   : > { %1778 = vmatpush3.bf16.msra.mxu1 %v2292_v46  ;;  %vm1612_vm15 = vmpackc.low %vm983_vm11, %vm982_vm12  ;;  %vm1350_vm11 = vcmask 1046534   ;;  %vm1353_vm12 = vcmask 1047559  }
  0xd3   : > { %1835 = vmatprep.subr.bf16.mxu1 %v2229_v25 }
  0xd4   : > { %v973_v16 = vpop.permute.xlu1 %972  ;;  %v970_v17 = vpop.permute.xlu0 %969 }
  0xd5   : > { %1780 = vmatmul.mubr.msk.bf16.vlgmr.msra.gmra.mrb[8].mxu1 %vm1564_vm3, %v2075_v63  ;;  %vm985_vm13 = vcmp.eq.s32.totalorder %v2309_v60, %v973_v16  ;;  %vm984_vm14 = vcmp.eq.s32.totalorder %v2309_v60, %v970_v17  ;;  %v1998_v16 = vld [vmem:[%s2561_s4] sm:$0xff]   ;;  %v2076_v17 = vmov 0.0  }
  0xd6   : > { %1783 = vmatprep.mubr.msk.bf16.mxu1 %vm1566_vm4, %v2075_v63  ;;  %1836 = vmatpush3.bf16.msra.mxu1 %v2229_v25  ;;  %vm1614_vm0 = vmpackc.low %vm985_vm13, %vm984_vm14  ;;  %v1979_v25 = vld [vmem:[%s2559_s2 + $0x68] sm:$0xff]   ;;  %vm2077_vm4 = vmmov 0  }
  0xd7   : > { %1837 = vmatprep.subr.bf16.mxu1 %v2234_v26  ;;  %1797 = vmatprep.subr.bf16.mxu0 %v1979_v25 }
  0xd8   : > { %v979_v18 = vpop.permute.xlu1 %978  ;;  %v976_v19 = vpop.permute.xlu0 %975  ;;  %1798 = vmatpush3.bf16.msra.mxu0 %v1979_v25 }
  0xd9   : > { %vm987_vm1 = vcmp.eq.s32.totalorder %v2309_v60, %v979_v18  ;;  %vm986_vm2 = vcmp.eq.s32.totalorder %v2309_v60, %v976_v19  ;;  %v1999_v18 = vld [vmem:[%s2561_s4 + $0x8] sm:$0xff]   ;;  %v2000_v19 = vld [vmem:[%s2561_s4 + $0x10] sm:$0xff]  }
  0xda   : > { %1838 = vmatpush3.bf16.msra.mxu1 %v2234_v26  ;;  %vm1616_vm3 = vmpackc.low %vm987_vm1, %vm986_vm2  ;;  %v1980_v26 = vld [vmem:[%s2559_s2 + $0x70] sm:$0xff]  }
  0xdb   : > { %1839 = vmatprep.subr.bf16.mxu1 %v2248_v31  ;;  %1799 = vmatprep.subr.bf16.mxu0 %v1980_v26 }
  0xdc   : > { %1800 = vmatpush3.bf16.msra.mxu0 %v1980_v26 }
  0xdd   : > { %1784 = vmatmul.mubr.msk.bf16.gmra.mrb[12].mxu1 %vm1568_vm9, %v2075_v63  ;;  %1801 = vmatprep.subr.bf16.mxu0 %v1981_v27  ;;  %vm1344_vm9 = vcmask 1044484  }
  0xde   : > { %1840 = vmatpush3.bf16.msra.mxu1 %v2248_v31  ;;  %1851 = vmatprep.mubr.msk.bf16.mxu1 %vm1610_vm10, %v2075_v63  ;;  %vm1347_vm10 = vcmask 1045509  }
  0xdf   : > { %1841 = vmatprep.subr.bf16.mxu1 %v2259_v35 }
  0xe0   : > { %1802 = vmatpush3.bf16.msra.mxu0 %v1981_v27 }
  0xe1   : > { %1811 = vmatprep.subr.bf16.mxu0 %v1982_v28 }
  0xe2   : > { %1842 = vmatpush3.bf16.msra.mxu1 %v2259_v35 }
  0xe3   : > { %1843 = vmatprep.subr.bf16.mxu1 %v2266_v37 }
  0xe6   : > { %1844 = vmatpush3.bf16.msra.mxu1 %v2266_v37 }
  0xe7   : > { %1845 = vmatprep.subr.bf16.mxu1 %v2274_v40 }
  0xea   : > { %1846 = vmatpush3.bf16.msra.mxu1 %v2274_v40 }
  0xeb   : > { %1847 = vmatprep.subr.bf16.mxu1 %v2283_v43 }
  0xee   : > { %1848 = vmatpush3.bf16.msra.mxu1 %v2283_v43 }
  0xef   : > { %1849 = vmatprep.subr.bf16.mxu1 %v2292_v46 }
  0xf2   : > { %1850 = vmatpush3.bf16.msra.mxu1 %v2292_v46 }
  0xf3   : > { %1883 = vmatprep.subr.bf16.mxu1 %v2076_v17 }
  0xf5   : > { %1852 = vmatmul.mubr.msk.bf16.vlgmr.msra.gmra.mrb[16].mxu1 %vm1612_vm15, %v2075_v63 }
  0xf6   : > { %1855 = vmatprep.mubr.msk.bf16.mxu1 %vm1614_vm0, %v2075_v63  ;;  %1884 = vmatpush3.bf16.msra.mxu1 %v1998_v16 }
  0xf7   : > { %1885 = vmatprep.subr.bf16.mxu1 %v2076_v17 }
  0xfa   : > { %1886 = vmatpush3.bf16.msra.mxu1 %v1999_v18 }
  0xfb   : > { %1887 = vmatprep.subr.bf16.mxu1 %v2076_v17 }
  0xfd   : > { %1856 = vmatmul.mubr.msk.bf16.gmra.mrb[20].mxu1 %vm1616_vm3, %v2075_v63 }
  0xfe   : > { %1888 = vmatpush3.bf16.msra.mxu1 %v2000_v19  ;;  %1899 = vmatprep.mubr.msk.bf16.mxu1 %vm2077_vm4, %v2076_v17 }
  0xff   : > { %1889 = vmatprep.subr.bf16.mxu1 %v2076_v17 }
 0x102   : > { %1890 = vmatpush3.bf16.msra.mxu1 %v2001_v20 }
 0x103   : > { %1891 = vmatprep.subr.bf16.mxu1 %v2076_v17 }
 0x106   : > { %1892 = vmatpush3.bf16.msra.mxu1 %v2002_v21 }
 0x107   : > { %1893 = vmatprep.subr.bf16.mxu1 %v2076_v17 }
 0x10a   : > { %1894 = vmatpush3.bf16.msra.mxu1 %v2003_v22 }
 0x10b   : > { %1895 = vmatprep.subr.bf16.mxu1 %v2076_v17 }
 0x10e   : > { %1896 = vmatpush3.bf16.msra.mxu1 %v2004_v23 }
 0x10f   : > { %1897 = vmatprep.subr.bf16.mxu1 %v2076_v17 }
 0x112   : > { %1898 = vmatpush3.bf16.msra.mxu1 %v2005_v24 }
 0x188   : > { %v1757_v29 = vpop.f32.mrb[0].mxu1 }
 0x189   : > { %v531_v30 = vpop.f32.mrb[1].mxu1 }
 0x18a   : > { %v1758_v31 = vpop.f32.mrb[2].mxu1 }
 0x18b   : > { %v563_v32 = vpack.c.bf16 %v1758_v31, %v1757_v29  ;;  %v534_v33 = vpop.f32.mrb[3].mxu1 }
 0x18c   : > { %v562_v34 = vpack.c.bf16 %v534_v33, %v531_v30 }
 0x190   : > { %v2405_v35 = vpop.f32.mrb[4].mxu1 }
 0x191   : > { %v547_v36 = vpop.f32.mrb[5].mxu1 }
 0x192   : > { %v2407_v37 = vpop.f32.mrb[6].mxu1 }
 0x193   : > { %v565_v38 = vpack.c.bf16 %v2407_v37, %v2405_v35  ;;  %v550_v39 = vpop.f32.mrb[7].mxu1 }
 0x194   : > { %v564_v40 = vpack.c.bf16 %v550_v39, %v547_v36 }
 0x1a8   : > { %v1781_v41 = vpop.f32.mrb[8].mxu1 }
 0x1a9   : > { %v669_v42 = vpop.f32.mrb[9].mxu1 }
 0x1aa   : > { %v1782_v43 = vpop.f32.mrb[10].mxu1 }
 0x1ab   : > { %v701_v44 = vpack.c.bf16 %v1782_v43, %v1781_v41  ;;  %v672_v45 = vpop.f32.mrb[11].mxu1 }
 0x1ac   : > { %v700_v46 = vpack.c.bf16 %v672_v45, %v669_v42 }
 0x1ae   : > { %1803 = vmatprep.mubr.bf16.mxu0 %v700_v46 }
 0x1af   : > { %1804 = vmatmul.mubr.bf16.vlgmr.msra.gmra.mrb[0].mxu0 %v701_v44 }
 0x1b0   : > { %1812 = vmatpush3.bf16.msra.mxu0 %v1982_v28  ;;  %v1785_v48 = vpop.f32.mrb[12].mxu1 }
 0x1b1   : > { %v685_v49 = vpop.f32.mrb[13].mxu1  ;;  %1813 = vmatprep.subr.bf16.mxu0 %v1983_v47 }
 0x1b2   : > { %v1786_v51 = vpop.f32.mrb[14].mxu1 }
 0x1b3   : > { %v703_v52 = vpack.c.bf16 %v1786_v51, %v1785_v48  ;;  %v688_v53 = vpop.f32.mrb[15].mxu1 }
 0x1b4   : > { %v702_v54 = vpack.c.bf16 %v688_v53, %v685_v49  ;;  %1814 = vmatpush3.bf16.msra.mxu0 %v1983_v47 }
 0x1b5   : > { %1815 = vmatprep.subr.bf16.mxu0 %v1984_v50 }
 0x1b6   : > { %1807 = vmatprep.mubr.bf16.mxu0 %v702_v54 }
 0x1b7   : > { %1808 = vmatmul.mubr.bf16.gmra.mrb[4].mxu0 %v703_v52 }
 0x1b8   : > { %1816 = vmatpush3.bf16.msra.mxu0 %v1984_v50  ;;  %1827 = vmatprep.mubr.bf16.mxu0 %v562_v34 }
 0x1b9   : > { %1817 = vmatprep.subr.bf16.mxu0 %v1985_v55 }
 0x1bc   : > { %1818 = vmatpush3.bf16.msra.mxu0 %v1985_v55  ;;  %v2492_v55 = vld [vmem:[%s2560_s3] ss:$0 sm:$0xff] }
 0x1bd   : > { %1819 = vmatprep.subr.bf16.mxu0 %v1986_v56 }
 0x1c0   : > { %1820 = vmatpush3.bf16.msra.mxu0 %v1986_v56 }
 0x1c1   : > { %1821 = vmatprep.subr.bf16.mxu0 %v1987_v57 }
 0x1c4   : > { %1822 = vmatpush3.bf16.msra.mxu0 %v1987_v57 }
 0x1c5   : > { %1823 = vmatprep.subr.bf16.mxu0 %v1988_v58 }
 0x1c8   : > { %1824 = vmatpush3.bf16.msra.mxu0 %v1988_v58  ;;  %v1853_v60 = vpop.f32.mrb[16].mxu1 }
 0x1c9   : > { %v1034_v61 = vpop.f32.mrb[17].mxu1  ;;  %1825 = vmatprep.subr.bf16.mxu0 %v1989_v59 }
 0x1ca   : > { %v1854_v63 = vpop.f32.mrb[18].mxu1 }
 0x1cb   : > { %v1066_v0 = vpack.c.bf16 %v1854_v63, %v1853_v60  ;;  %v1037_v1 = vpop.f32.mrb[19].mxu1 }
 0x1cc   : > { %1826 = vmatpush3.bf16.msra.mxu0 %v1989_v59  ;;  %v1065_v2 = vpack.c.bf16 %v1037_v1, %v1034_v61 }
 0x1cd   : > { %1859 = vmatprep.subr.bf16.mxu0 %v1990_v62 }
 0x1cf   : > { %1828 = vmatmul.mubr.bf16.vlgmr.msra.gmra.mrb[0].mxu0 %v563_v32 }
 0x1d0   : > { %1831 = vmatprep.mubr.bf16.mxu0 %v564_v40  ;;  %1860 = vmatpush3.bf16.msra.mxu0 %v1990_v62  ;;  %v1857_v4 = vpop.f32.mrb[20].mxu1 }
 0x1d1   : > { %v1050_v5 = vpop.f32.mrb[21].mxu1  ;;  %1861 = vmatprep.subr.bf16.mxu0 %v1991_v3 }
 0x1d2   : > { %v1858_v7 = vpop.f32.mrb[22].mxu1 }
 0x1d3   : > { %v1068_v8 = vpack.c.bf16 %v1858_v7, %v1857_v4  ;;  %v1053_v9 = vpop.f32.mrb[23].mxu1 }
 0x1d4   : > { %v1067_v10 = vpack.c.bf16 %v1053_v9, %v1050_v5  ;;  %1862 = vmatpush3.bf16.msra.mxu0 %v1991_v3 }
 0x1d5   : > { %1863 = vmatprep.subr.bf16.mxu0 %v1992_v6 }
 0x1d7   : > { %1832 = vmatmul.mubr.bf16.gmra.mrb[4].mxu0 %v565_v38 }
 0x1d8   : > { %1864 = vmatpush3.bf16.msra.mxu0 %v1992_v6  ;;  %1875 = vmatprep.mubr.bf16.mxu0 %v1065_v2 }
 0x1d9   : > { %1865 = vmatprep.subr.bf16.mxu0 %v1993_v11 }
 0x1dc   : > { %1866 = vmatpush3.bf16.msra.mxu0 %v1993_v11 }
 0x1dd   : > { %1867 = vmatprep.subr.bf16.mxu0 %v1994_v12 }
 0x1e0   : > { %1868 = vmatpush3.bf16.msra.mxu0 %v1994_v12 }
 0x1e1   : > { %1869 = vmatprep.subr.bf16.mxu0 %v1995_v13 }
 0x1e4   : > { %1870 = vmatpush3.bf16.msra.mxu0 %v1995_v13 }
 0x1e5   : > { %1871 = vmatprep.subr.bf16.mxu0 %v1996_v14 }
 0x1e8   : > { %1872 = vmatpush3.bf16.msra.mxu0 %v1996_v14 }
 0x1e9   : > { %1873 = vmatprep.subr.bf16.mxu0 %v1997_v15 }
 0x1ec   : > { %1874 = vmatpush3.bf16.msra.mxu0 %v1997_v15 }
 0x1ef   : > { %1876 = vmatmul.mubr.bf16.vlgmr.msra.gmra.mrb[0].mxu0 %v1066_v0 }
 0x1f0   : > { %1879 = vmatprep.mubr.bf16.mxu0 %v1067_v10 }
 0x1f7   : > { %1880 = vmatmul.mubr.bf16.gmra.mrb[4].mxu0 %v1068_v8 }
 0x2c2   : > { %v1877_v25 = vpop.f32.mrb[0].mxu0 }
 0x2c3   : > { %v1222_v26 = vsel %vm1207_vm5, %v1877_v25, -inf  ;;  %v1168_v27 = vpop.f32.mrb[1].mxu0 }
 0x2c4   : > { %v1223_v28 = vrot.slane %v1222_v26, 4  ;;  %v1208_v29 = vsel %vm1207_vm5, %v1168_v27, -inf  ;;  %v1878_v30 = vpop.f32.mrb[2].mxu0 }
 0x2c5   : > { %v1209_v31 = vrot.slane %v1208_v29, 4  ;;  %v1229_v32 = vsel %vm1207_vm5, %v1878_v30, -inf  ;;  %v1171_v33 = vpop.f32.mrb[3].mxu0 }
 0x2c6   : > { %v1224_v34 = vmax.f32 %v1222_v26, %v1223_v28  ;;  %v1230_v35 = vrot.slane %v1229_v32, 4  ;;  %v1215_v36 = vsel %vm1207_vm5, %v1171_v33, -inf }
 0x2c7   : > { %v1210_v37 = vmax.f32 %v1208_v29, %v1209_v31  ;;  %v1216_v38 = vrot.slane %v1215_v36, 4 }
 0x2c8   : > { %v1225_v39 = vrot.slane %v1224_v34, 2  ;;  %v1231_v40 = vmax.f32 %v1229_v32, %v1230_v35 }
 0x2c9   : > { %v1211_v41 = vrot.slane %v1210_v37, 2  ;;  %v1217_v42 = vmax.f32 %v1215_v36, %v1216_v38 }
 0x2ca   : > { %v1226_v43 = vmax.f32 %v1224_v34, %v1225_v39  ;;  %v1232_v44 = vrot.slane %v1231_v40, 2  ;;  %v1881_v45 = vpop.f32.mrb[4].mxu0 }
 0x2cb   : > { %v1212_v46 = vmax.f32 %v1210_v37, %v1211_v41  ;;  %v1218_v47 = vrot.slane %v1217_v42, 2  ;;  %v1250_v48 = vsel %vm1207_vm5, %v1881_v45, -inf  ;;  %v1184_v49 = vpop.f32.mrb[5].mxu0 }
 0x2cc   : > { %v1227_v50 = vrot.slane %v1226_v43, 1  ;;  %v1233_v51 = vmax.f32 %v1231_v40, %v1232_v44  ;;  %v1251_v52 = vrot.slane %v1250_v48, 4  ;;  %v1236_v53 = vsel %vm1207_vm5, %v1184_v49, -inf  ;;  %v1882_v54 = vpop.f32.mrb[6].mxu0 }
 0x2cd   : > { %v1213_v56 = vrot.slane %v1212_v46, 1  ;;  %v1219_v57 = vmax.f32 %v1217_v42, %v1218_v47  ;;  %v1237_v58 = vrot.slane %v1236_v53, 4  ;;  %v1257_v59 = vsel %vm1207_vm5, %v1882_v54, -inf  ;;  %v1187_v60 = vpop.f32.mrb[7].mxu0 }
 0x2ce   : > { %v1228_v61 = vmax.f32 %v1226_v43, %v1227_v50  ;;  %v1234_v62 = vrot.slane %v1233_v51, 1  ;;  %v1252_v63 = vmax.f32 %v1250_v48, %v1251_v52  ;;  %v1258_v0 = vrot.slane %v1257_v59, 4 }
 0x2cf   : > { %v1214_v1 = vmax.f32 %v1212_v46, %v1213_v56  ;;  %v1220_v2 = vrot.slane %v1219_v57, 1  ;;  %v1238_v3 = vmax.f32 %v1236_v53, %v1237_v58  ;;  %v1243_v4 = vsel %vm1207_vm5, %v1187_v60, -inf }
 0x2d0   : > { %v1273_v5 = vadd.f32 %v2492_v55, %v1228_v61  ;;  %v1235_v6 = vmax.f32 %v1233_v51, %v1234_v62  ;;  %v1253_v7 = vrot.slane %v1252_v63, 2  ;;  %v1259_v8 = vmax.f32 %v1257_v59, %v1258_v0 }
 0x2d1   : > { %v1271_v9 = vadd.f32 %v2492_v55, %v1214_v1  ;;  %v1221_v10 = vmax.f32 %v1219_v57, %v1220_v2  ;;  %v1239_v11 = vrot.slane %v1238_v3, 2  ;;  %v1244_v12 = vrot.slane %v1243_v4, 4 }
 0x2d2   : > { %v1281_v13 = vmax.f32 %v1273_v5, 0.0  ;;  %v1274_v14 = vadd.f32 %v2492_v55, %v1235_v6  ;;  %v1254_v15 = vmax.f32 %v1252_v63, %v1253_v7  ;;  %v1260_v16 = vrot.slane %v1259_v8, 2 }
 0x2d3   : > { %v1279_v17 = vmax.f32 %v1271_v9, 0.0  ;;  %v1272_v18 = vadd.f32 %v2492_v55, %v1221_v10  ;;  %v1240_v19 = vmax.f32 %v1238_v3, %v1239_v11  ;;  %v1245_v20 = vmax.f32 %v1243_v4, %v1244_v12  ;;  %v1643_v9 = vld [vmem:[%s2562_s5] ss:$0 sm:$0xff] }
 0x2d4   : > { %v1289_v21 = vpack.c.bf16 %v1281_v13, %v1281_v13  ;;  %v1282_v22 = vmax.f32 %v1274_v14, 0.0  ;;  %v1255_v23 = vrot.slane %v1254_v15, 1  ;;  %v1261_v24 = vmax.f32 %v1259_v8, %v1260_v16 }
 0x2d5   : > { %v1280_v25 = vmax.f32 %v1272_v18, 0.0  ;;  %v1241_v26 = vrot.slane %v1240_v19, 1  ;;  %v1246_v27 = vrot.slane %v1245_v20, 2  ;;  %v1287_v31 = vpack.c.bf16 %v1279_v17, %v1279_v17 }
 0x2d6   : > { %v1290_v28 = vpack.c.bf16 %v1282_v22, %v1282_v22  ;;  %v1256_v29 = vmax.f32 %v1254_v15, %v1255_v23  ;;  %v1262_v30 = vrot.slane %v1261_v24, 1  ;;  %v1328_v35 = vunpack.c.l.b16 %v1289_v21 }
 0x2d7   : > { %v1288_v32 = vpack.c.bf16 %v1280_v25, %v1280_v25  ;;  %v1242_v33 = vmax.f32 %v1240_v19, %v1241_v26  ;;  %v1247_v34 = vmax.f32 %v1245_v20, %v1246_v27  ;;  %v1326_v44 = vunpack.c.l.b16 %v1287_v31 }
 0x2d8   : > { %v1277_v36 = vadd.f32 %v2492_v55, %v1256_v29  ;;  %v1263_v37 = vmax.f32 %v1261_v24, %v1262_v30  ;;  %v1329_v38 = vunpack.c.l.b16 %v1290_v28  ;;  %v1337_v48 = vrot.slane %v1328_v35, 6 }
 0x2d9   : > { %v1327_v39 = vunpack.c.l.b16 %v1288_v32  ;;  %v1275_v40 = vadd.f32 %v2492_v55, %v1242_v33  ;;  %v1248_v41 = vrot.slane %v1247_v34, 1 }
 0x2da   : > { %v1285_v42 = vmax.f32 %v1277_v36, 0.0  ;;  %v1278_v43 = vadd.f32 %v2492_v55, %v1263_v37  ;;  %v1340_v50 = vrot.slane %v1329_v38, 5 }
 0x2db   : > { %v1334_v45 = vrot.slane %v1327_v39, 7  ;;  %v1283_v46 = vmax.f32 %v1275_v40, 0.0  ;;  %v1249_v47 = vmax.f32 %v1247_v34, %v1248_v41 }
 0x2dc   : > { %v1286_v49 = vmax.f32 %v1278_v43, 0.0  ;;  %v1293_v56 = vpack.c.bf16 %v1285_v42, %v1285_v42 }
 0x2dd   : > { %v1336_v51 = vsel %vm1335_vm6, %v1334_v45, %v1326_v44  ;;  %v1291_v52 = vpack.c.bf16 %v1283_v46, %v1283_v46  ;;  %v1276_v53 = vadd.f32 %v2492_v55, %v1249_v47 }
 0x2de   : > { %v1339_v54 = vsel %vm1338_vm7, %v1337_v48, %v1336_v51  ;;  %v1294_v59 = vpack.c.bf16 %v1286_v49, %v1286_v49  ;;  %v1332_v63 = vunpack.c.l.b16 %v1293_v56 }
 0x2df   : > { %v1330_v57 = vunpack.c.l.b16 %v1291_v52  ;;  %v1342_v58 = vsel %vm1341_vm8, %v1340_v50, %v1339_v54  ;;  %v1284_v60 = vmax.f32 %v1276_v53, 0.0 }
 0x2e0   : > { %v1333_v1 = vunpack.c.l.b16 %v1294_v59  ;;  %v1349_v4 = vrot.slane %v1332_v63, 2 }
 0x2e1   : > { %v1343_v61 = vrot.slane %v1330_v57, 4  ;;  %v1292_v62 = vpack.c.bf16 %v1284_v60, %v1284_v60 }
 0x2e2   : > { %v1352_v5 = vrot.slane %v1333_v1, 1 }
 0x2e3   : > { %v1345_v0 = vsel %vm1344_vm9, %v1343_v61, %v1342_v58  ;;  %v1331_v2 = vunpack.c.l.b16 %v1292_v62 }
 0x2e5   : > { %v1346_v3 = vrot.slane %v1331_v2, 3 }
 0x2e7   : > { %v1348_v55 = vsel %vm1347_vm10, %v1346_v3, %v1345_v0 }
 0x2e8   : > { %v1351_v6 = vsel %vm1350_vm11, %v1349_v4, %v1348_v55 }
 0x2e9   : > { %v1354_v7 = vsel %vm1353_vm12, %v1352_v5, %v1351_v6 }
 0x2ea   : > { %v1355_v8 = vpack.c.b16 %v1354_v7, %v1354_v7 }
 0x2ec   : > { %1900 = vmatmul.mubr.bf16.vlgmr.msra.gmra.mrb[24].mxu1 %v1355_v8 }
 0x3bf   : > { %v1439_v10 = vpop.f32.mrb[24].mxu1 }
 0x3c0   : > { %v1440_v11 = vadd.f32 %v1643_v9, %v1439_v10  ;;  %v1901_v12 = vpop.f32.mrb[25].mxu1 }
 0x3c1   : > { %v1442_v13 = vpop.f32.mrb[26].mxu1 }
 0x3c2   : > { %v1652_v14 = vmul.f32 -1.442695, %v1440_v11  ;;  %v1902_v15 = vpop.f32.mrb[27].mxu1 }
 0x3c4   : > { %2006 = vpow2.f32 %v1652_v14 }
 0x3ce   : > { %v2007_v16 = vpop.eup %2006 }
 0x3cf   : > { %v1448_v17 = vadd.f32 1.0, %v2007_v16 }
 0x3d1   : > { %2008 = vrcp.f32 %v1448_v17 }
 0x3db   : > { %v2009_v18 = vpop.eup %2008 }
 0x3dc   : > { %1451 = vst [vmem:[%s376_s26] sm:$0xff] %v2009_v18 }
 0x3dd   : > { %2023 = shalt.err (!%p2020_p5)
}
 0x3de   : > { %s2024_s16 = scalar_lea.hbm %s2513_s10, 128  ;;  %s2028_s18 = scalar_lea.hbm %s2563_s6, 256 }
 0x3df   : > { %p2025_p7 = scmp.ne.s32.totalorder %s2513_s10, %s2024_s16  ;;  %p2029_p12 = scmp.lt.u32.totalorder %s2513_s10, %s2563_s6 }
 0x3e0   : > { %p2030_p13 = scmp.lt.u32.totalorder %s2028_s18, %s2024_s16  ;;  %p2032_p1 = scmp.lt.u32.totalorder %s2024_s16, %s2513_s10 }
 0x3e1   : > { %p2026_p10 = pnand %p2025_p7, %p2152_p6 }
 0x3e2   : > { %p2031_p0 = por %p2030_p13, %p2029_p12 }
 0x3e3   : > { %p2027_p11 = pneg %p2026_p10 }
 0x3e4   : > { %p2033_p2 = por %p2032_p1, %p2031_p0 }
 0x3e6   : > { %p2034_p3 = pnand %p2033_p2, %p2027_p11 }
 0x3e8   : > { %2037 = shalt.err (!%p2034_p3)
}
 0x3e9   : > { %1921 = dma.vmem_to_hbm [thread:$0]  (%p2152_p6), %s2515_s28, 128, %s2513_s10, %s1453_s11  }
 0x3ea PF: > { %s1478_s26 = sand.u32 1, %s2060_s21   ;;  %p1924_p4 = pnand %p1533_p9, %p2156_p8 }
 0x3eb   : > { %s1479_s29 = scalar_lea.sflag [#allocation4], %s1478_s26 }
 0x3ec   : > { %2055 = dma.done.wait (!%p1924_p4), %s1479_s29, 128  }
 0x3ed   : > { %2057 = vsyncadd (!%p1924_p4), %s1479_s29, 4294967168  ;;  %p16_p5 = scmp.ge.s32.totalorder %s2137_s27, 4   ;;  %s2566_s21 = smov %s2064_s22 }
 0x3ee   : > { %s2567_s22 = smov %s2068_s23  ;;  %s2568_s23 = smov %s2150_s30 }
 0x3ef   : > { %s2569_s24 = smov %s2137_s27  ;;  %18 = sbr.rel (!%p16_p5) target bundleno = 3 (0x3), region = 126 }
 0x3f6   :  { %1484 = vsyncpa [#allocation4], 1 }
 0x3f7   :  { %1486 = vsyncpa [#allocation4 + $0x1], 1 }

</bundles_post_ra>
